<compile_context>
chip_gen: v7x
topology: tpu7x:2x2x1
jax: 0.10.0
libtpu: 0.0.40
codegen_flags: <defaults>
</compile_context>

<pallas_src>
import functools

import jax
import jax.numpy as jnp
import numpy as np
from jax.experimental import pallas as pl
from jax.experimental.pallas import tpu as pltpu


def _residual_block_kernel(x_ref, masks_ref, w1_ref, b1_ref, w2_ref, b2_ref,
                           out_ref, slab_ref, *, compute_dtype, W):
    """Fused residual block for `n_img` images.

    refs (in order):
      x_ref    : (n_img, C, H*W)      f32            lane-dense NCHW input tile
      masks_ref: (9, H*W)             f32            per-tap validity masks (== zero padding)
      w1_ref   : (C, 9*Cpad)          compute_dtype  conv1 weights (tap-major, channel-minor)
      b1_ref   : (C, 1)               f32            conv1 bias
      w2_ref   : (C, 9*Cpad)          compute_dtype  conv2 weights
      b2_ref   : (C, 1)               f32            conv2 bias
      out_ref  : (n_img, C, H*W)                     lane-dense output tile
      slab_ref : (9*Cpad, n_img*H*W)  compute_dtype  shared im2col slab (conv1, then conv2)
    """
    n_img, C, P = x_ref.shape
    Cpad = slab_ref.shape[0] // 9

    # Zero rows used to pad each tap's channel group up to a full sublane group.
    chan_pad = jnp.zeros((Cpad - C, P), jnp.float32) if Cpad > C else None

    def conv3x3(w_ref, b_ref, get_img):
        # Channel-padded f32 source per image.
        srcs = []
        for img in range(n_img):
            src = get_img(img)                                    # (C, P) f32
            if Cpad > C:
                src = jnp.concatenate([src, chan_pad], axis=0)    # (Cpad, P)
            srcs.append(src)

        # Build the im2col slab: tap (kh, kw) at output pixel p is source pixel
        # p + (kh-1)*W + (kw-1).  One lane roll (XLU) + one validity-mask multiply per
        # tap; the mask zeroes positions whose source pixel is outside the image, which
        # is exactly the conv's zero padding.  Rolls are per-image, so there is no
        # cross-image contamination.
        for kh in range(3):
            for kw in range(3):
                t = kh * 3 + kw
                shift = (-(kh - 1) * W - (kw - 1)) % P            # tap[p] = src[p + off]
                mask_t = masks_ref[t:t + 1, :]                    # (1, P)
                pieces = []
                for img in range(n_img):
                    tap = srcs[img] if shift == 0 else pltpu.roll(srcs[img], shift, axis=1)
                    if shift != 0:                                # center tap is always valid
                        tap = tap * mask_t
                    pieces.append(tap.astype(compute_dtype))
                tile = pieces[0] if n_img == 1 else jnp.concatenate(pieces, axis=1)
                # Full-sublane (Cpad rows), lane-dense, unmasked store.
                slab_ref[t * Cpad:(t + 1) * Cpad, :] = tile

        # ONE MXU matmul per conv: (C, 9*Cpad) x (9*Cpad, n_img*P) -> (C, n_img*P), f32 acc.
        acc = jnp.dot(w_ref[...], slab_ref[...], preferred_element_type=jnp.float32)
        return acc + b_ref[...]                                   # lane-broadcast bias (f32)

    # --- conv1 + bias + ReLU; the activation never leaves VMEM/vregs ---
    y1 = jnp.maximum(conv3x3(w1_ref, b1_ref, lambda img: x_ref[img, :, :]), 0.0)

    # --- conv2 + bias + residual add + ReLU; one lane-dense (C, P) store per image ---
    acc2 = conv3x3(w2_ref, b2_ref, lambda img: y1[:, img * P:(img + 1) * P])
    for img in range(n_img):
        y = acc2[:, img * P:(img + 1) * P] + x_ref[img, :, :]     # residual stays f32
        out_ref[img, :, :] = jnp.maximum(y, 0.0).astype(out_ref.dtype)


@functools.partial(jax.jit, static_argnames=("compute_dtype", "images_per_step"))
def residual_block(x_nchw, w1_oihw, b1, w2_oihw, b2, *,
                   compute_dtype=jnp.float32, images_per_step=None):
    """Forward pass matching the PyTorch ResidualBlock (kernel=3, pad=1, stride=1).

    x_nchw: (N, C, H, W) float32.  Requires in_channels == out_channels (the module's
    residual add only type-checks in that configuration).
    compute_dtype: MXU operand dtype; jnp.bfloat16 recommended on all generations
    (v5e/v6e/v7x) -- accumulation, bias, residual and ReLU stay in f32 either way.
    images_per_step: images folded onto the matmul lane axis per grid step (None = auto;
    on v7x prefer a value that keeps >= 2 grid steps so both TensorCores get work).
    """
    N, Cin, H, W = x_nchw.shape
    Cmid = w1_oihw.shape[0]
    Cout = w2_oihw.shape[0]
    assert w1_oihw.shape == (Cmid, Cin, 3, 3)
    assert w2_oihw.shape == (Cout, Cmid, 3, 3)
    assert Cin == Cmid == Cout, "residual add requires in_channels == out_channels"
    C = Cin
    P = H * W

    # Sublane-aligned channel group per tap (8 rows for f32 operands, 16 for bf16).
    sub = max(8, 32 // jnp.dtype(compute_dtype).itemsize)
    Cpad = ((C + sub - 1) // sub) * sub

    if images_per_step is None:
        images_per_step = 1
        for cand in (8, 4, 2):
            if N % cand == 0:
                images_per_step = cand
                break
    assert N % images_per_step == 0
    n_img = images_per_step
    L = n_img * P

    # Weights: (O, I, 3, 3) -> (O, kh, kw, I) -> zero-pad I to Cpad -> (O, 9*Cpad).
    # Matches the slab's (tap-major, channel-minor, sublane-aligned) contraction ordering.
    def pack_w(w):
        wt = jnp.transpose(w, (0, 2, 3, 1))
        wt = jnp.pad(wt, ((0, 0), (0, 0), (0, 0), (0, Cpad - C)))
        return wt.reshape(w.shape[0], 9 * Cpad).astype(compute_dtype)

    w1_mat = pack_w(w1_oihw)
    w2_mat = pack_w(w2_oihw)
    b1_col = b1.reshape(C, 1).astype(jnp.float32)
    b2_col = b2.reshape(C, 1).astype(jnp.float32)

    # Per-tap validity masks over the flat H*W domain (tiny constant; fetched once).
    ii, jj = np.meshgrid(np.arange(H), np.arange(W), indexing="ij")
    m = np.zeros((9, P), np.float32)
    for kh in range(3):
        for kw in range(3):
            dh, dw = kh - 1, kw - 1
            valid = (ii + dh >= 0) & (ii + dh < H) & (jj + dw >= 0) & (jj + dw < W)
            m[kh * 3 + kw] = valid.reshape(-1).astype(np.float32)
    masks = jnp.asarray(m)

    # Lane-dense (NCHW-contiguous, metadata-only) input view.
    x_flat = x_nchw.reshape(N, C, P)

    kernel = functools.partial(_residual_block_kernel, compute_dtype=compute_dtype, W=W)

    out_flat = pl.pallas_call(
        kernel,
        out_shape=jax.ShapeDtypeStruct((N, C, P), x_nchw.dtype),
        grid=(N // n_img,),
        in_specs=[
            pl.BlockSpec((n_img, C, P), lambda n: (n, 0, 0)),
            pl.BlockSpec((9, P), lambda n: (0, 0)),
            pl.BlockSpec((C, 9 * Cpad), lambda n: (0, 0)),
            pl.BlockSpec((C, 1), lambda n: (0, 0)),
            pl.BlockSpec((C, 9 * Cpad), lambda n: (0, 0)),
            pl.BlockSpec((C, 1), lambda n: (0, 0)),
        ],
        out_specs=pl.BlockSpec((n_img, C, P), lambda n: (n, 0, 0)),
        scratch_shapes=[
            pltpu.VMEM((9 * Cpad, L), compute_dtype),   # shared im2col slab (conv1 then conv2)
        ],
        compiler_params=pltpu.CompilerParams(
            dimension_semantics=("parallel",)),
    )(x_flat, masks, w1_mat, b1_col, w2_mat, b2_col)

    # (N, C, H*W) is already NCHW order -> metadata-only reshape, no transpose.
    return out_flat.reshape(N, C, H, W)


def _reference_forward(x, w1, b1, w2, b2):
    """Pure-JAX reference (lax conv), NCHW / OIHW, for correctness check."""
    dn = ("NCHW", "OIHW", "NCHW")
    y = jax.lax.conv_general_dilated(x, w1, (1, 1), ((1, 1), (1, 1)),
                                     dimension_numbers=dn)
    y = jnp.maximum(y + b1[None, :, None, None], 0.0)
    y = jax.lax.conv_general_dilated(y, w2, (1, 1), ((1, 1), (1, 1)),
                                     dimension_numbers=dn)
    y = y + b2[None, :, None, None] + x
    return jnp.maximum(y, 0.0)


if __name__ == "__main__":
    # Small shapes consistent with the module: batch=2, channels=4, spatial=16.
    N, C, H, W = 2, 4, 16, 16
    K = 3

    key = jax.random.PRNGKey(0)
    kx, k1, k2, k3, k4 = jax.random.split(key, 5)

    x = jax.random.normal(kx, (N, C, H, W), dtype=jnp.float32)

    # Deterministic synthetic parameters (Conv2d weight shape: (Cout, Cin, KH, KW)).
    bound = 1.0 / np.sqrt(C * K * K)
    w1 = jax.random.uniform(k1, (C, C, K, K), jnp.float32, -bound, bound)
    b1 = jax.random.uniform(k2, (C,), jnp.float32, -bound, bound)
    w2 = jax.random.uniform(k3, (C, C, K, K), jnp.float32, -bound, bound)
    b2 = jax.random.uniform(k4, (C,), jnp.float32, -bound, bound)

    ref = jax.block_until_ready(_reference_forward(x, w1, b1, w2, b2))

    # f32 operand path, batch folded into one grid step: matches the lax reference tightly.
    out = jax.block_until_ready(residual_block(x, w1, b1, w2, b2))
    assert out.shape == (N, C, H, W) and out.dtype == jnp.float32
    np.testing.assert_allclose(np.asarray(out), np.asarray(ref),
                               rtol=2e-4, atol=2e-4)

    # Multi-grid-step path (one image per step; the layout a v7x megacore split would use).
    out_split = jax.block_until_ready(
        residual_block(x, w1, b1, w2, b2, images_per_step=1))
    np.testing.assert_allclose(np.asarray(out_split), np.asarray(ref),
                               rtol=2e-4, atol=2e-4)

    # bf16 MXU-operand path (f32 accumulation / bias / residual / ReLU).
    out_bf16 = jax.block_until_ready(
        residual_block(x, w1, b1, w2, b2, compute_dtype=jnp.bfloat16))
    np.testing.assert_allclose(np.asarray(out_bf16), np.asarray(ref),
                               rtol=5e-2, atol=5e-2)

    print("KERNEL_OK")
</pallas_src>

<mosaic_0001>
module attributes {stable_mosaic.version = 11 : i64} {
  func.func @_residual_block_kernel(%arg0: i32, %arg1: memref<2x4x256xf32, #tpu.memory_space<vmem>>, %arg2: memref<9x256xf32, #tpu.memory_space<vmem>>, %arg3: memref<4x72xf32, #tpu.memory_space<vmem>>, %arg4: memref<4x1xf32, #tpu.memory_space<vmem>>, %arg5: memref<4x72xf32, #tpu.memory_space<vmem>>, %arg6: memref<4x1xf32, #tpu.memory_space<vmem>>, %arg7: memref<2x4x256xf32, #tpu.memory_space<vmem>>, %arg8: memref<72x512xf32, #tpu.memory_space<vmem>>) attributes {dimension_semantics = [#tpu.dimension_semantics<parallel>], iteration_bounds = array<i64: 1>, scalar_prefetch = 0 : i64, scratch_operands = 1 : i64, tpu.core_type = #tpu.core_type<tc>, window_params = [{transform_indices = @transform_0, window_bounds = array<i64: 2, 4, 256>}, {pipeline_mode = #tpu.pipeline_mode<synchronous>, transform_indices = @transform_1, window_bounds = array<i64: 9, 256>}, {pipeline_mode = #tpu.pipeline_mode<synchronous>, transform_indices = @transform_2, window_bounds = array<i64: 4, 72>}, {pipeline_mode = #tpu.pipeline_mode<synchronous>, transform_indices = @transform_3, window_bounds = array<i64: 4, 1>}, {pipeline_mode = #tpu.pipeline_mode<synchronous>, transform_indices = @transform_4, window_bounds = array<i64: 4, 72>}, {pipeline_mode = #tpu.pipeline_mode<synchronous>, transform_indices = @transform_5, window_bounds = array<i64: 4, 1>}, {transform_indices = @transform_6, window_bounds = array<i64: 2, 4, 256>}]} {
    %cst = arith.constant 0.000000e+00 : f32
    %0 = vector.broadcast %cst : f32 to vector<4x256xf32>
    %c0 = arith.constant 0 : index
    %c0_0 = arith.constant 0 : index
    %c0_1 = arith.constant 0 : index
    %1 = vector.load %arg1[%c0, %c0_0, %c0_1] : memref<2x4x256xf32, #tpu.memory_space<vmem>>, vector<1x4x256xf32>
    %2 = vector.shape_cast %1 : vector<1x4x256xf32> to vector<4x256xf32>
    %3 = tpu.concatenate %2, %0 in 0 : vector<4x256xf32>, vector<4x256xf32> -> vector<8x256xf32>
    %c1 = arith.constant 1 : index
    %c0_2 = arith.constant 0 : index
    %c0_3 = arith.constant 0 : index
    %4 = vector.load %arg1[%c1, %c0_2, %c0_3] : memref<2x4x256xf32, #tpu.memory_space<vmem>>, vector<1x4x256xf32>
    %5 = vector.shape_cast %4 : vector<1x4x256xf32> to vector<4x256xf32>
    %6 = tpu.concatenate %5, %0 in 0 : vector<4x256xf32>, vector<4x256xf32> -> vector<8x256xf32>
    %c0_4 = arith.constant 0 : index
    %c0_5 = arith.constant 0 : index
    %7 = vector.load %arg2[%c0_4, %c0_5] : memref<9x256xf32, #tpu.memory_space<vmem>>, vector<1x256xf32>
    %c17_i32 = arith.constant 17 : i32
    %8 = tpu.dynamic_rotate %3 by %c17_i32 dim 1 : vector<8x256xf32>, i32 -> vector<8x256xf32>
    %9 = vector.broadcast %7 : vector<1x256xf32> to vector<8x256xf32>
    %10 = arith.mulf %8, %9 : vector<8x256xf32>
    %c17_i32_6 = arith.constant 17 : i32
    %11 = tpu.dynamic_rotate %6 by %c17_i32_6 dim 1 : vector<8x256xf32>, i32 -> vector<8x256xf32>
    %12 = vector.broadcast %7 : vector<1x256xf32> to vector<8x256xf32>
    %13 = arith.mulf %11, %12 : vector<8x256xf32>
    %14 = tpu.concatenate %10, %13 in 1 : vector<8x256xf32>, vector<8x256xf32> -> vector<8x512xf32>
    %c0_7 = arith.constant 0 : index
    %c0_8 = arith.constant 0 : index
    %15 = vector.load %arg8[%c0_7, %c0_8] : memref<72x512xf32, #tpu.memory_space<vmem>>, vector<8x512xf32>
    tpu.vector_store %arg8[%c0_7, %c0_8], %14 {strides = array<i32>} : memref<72x512xf32, #tpu.memory_space<vmem>>, vector<8x512xf32>,
    %c1_9 = arith.constant 1 : index
    %c0_10 = arith.constant 0 : index
    %16 = vector.load %arg2[%c1_9, %c0_10] : memref<9x256xf32, #tpu.memory_space<vmem>>, vector<1x256xf32>
    %c16_i32 = arith.constant 16 : i32
    %17 = tpu.dynamic_rotate %3 by %c16_i32 dim 1 : vector<8x256xf32>, i32 -> vector<8x256xf32>
    %18 = vector.broadcast %16 : vector<1x256xf32> to vector<8x256xf32>
    %19 = arith.mulf %17, %18 : vector<8x256xf32>
    %c16_i32_11 = arith.constant 16 : i32
    %20 = tpu.dynamic_rotate %6 by %c16_i32_11 dim 1 : vector<8x256xf32>, i32 -> vector<8x256xf32>
    %21 = vector.broadcast %16 : vector<1x256xf32> to vector<8x256xf32>
    %22 = arith.mulf %20, %21 : vector<8x256xf32>
    %23 = tpu.concatenate %19, %22 in 1 : vector<8x256xf32>, vector<8x256xf32> -> vector<8x512xf32>
    %c8 = arith.constant 8 : index
    %c0_12 = arith.constant 0 : index
    %24 = vector.load %arg8[%c8, %c0_12] : memref<72x512xf32, #tpu.memory_space<vmem>>, vector<8x512xf32>
    tpu.vector_store %arg8[%c8, %c0_12], %23 {strides = array<i32>} : memref<72x512xf32, #tpu.memory_space<vmem>>, vector<8x512xf32>,
    %c2 = arith.constant 2 : index
    %c0_13 = arith.constant 0 : index
    %25 = vector.load %arg2[%c2, %c0_13] : memref<9x256xf32, #tpu.memory_space<vmem>>, vector<1x256xf32>
    %c15_i32 = arith.constant 15 : i32
    %26 = tpu.dynamic_rotate %3 by %c15_i32 dim 1 : vector<8x256xf32>, i32 -> vector<8x256xf32>
    %27 = vector.broadcast %25 : vector<1x256xf32> to vector<8x256xf32>
    %28 = arith.mulf %26, %27 : vector<8x256xf32>
    %c15_i32_14 = arith.constant 15 : i32
    %29 = tpu.dynamic_rotate %6 by %c15_i32_14 dim 1 : vector<8x256xf32>, i32 -> vector<8x256xf32>
    %30 = vector.broadcast %25 : vector<1x256xf32> to vector<8x256xf32>
    %31 = arith.mulf %29, %30 : vector<8x256xf32>
    %32 = tpu.concatenate %28, %31 in 1 : vector<8x256xf32>, vector<8x256xf32> -> vector<8x512xf32>
    %c16 = arith.constant 16 : index
    %c0_15 = arith.constant 0 : index
    %33 = vector.load %arg8[%c16, %c0_15] : memref<72x512xf32, #tpu.memory_space<vmem>>, vector<8x512xf32>
    tpu.vector_store %arg8[%c16, %c0_15], %32 {strides = array<i32>} : memref<72x512xf32, #tpu.memory_space<vmem>>, vector<8x512xf32>,
    %c3 = arith.constant 3 : index
    %c0_16 = arith.constant 0 : index
    %34 = vector.load %arg2[%c3, %c0_16] : memref<9x256xf32, #tpu.memory_space<vmem>>, vector<1x256xf32>
    %c1_i32 = arith.constant 1 : i32
    %35 = tpu.dynamic_rotate %3 by %c1_i32 dim 1 : vector<8x256xf32>, i32 -> vector<8x256xf32>
    %36 = vector.broadcast %34 : vector<1x256xf32> to vector<8x256xf32>
    %37 = arith.mulf %35, %36 : vector<8x256xf32>
    %c1_i32_17 = arith.constant 1 : i32
    %38 = tpu.dynamic_rotate %6 by %c1_i32_17 dim 1 : vector<8x256xf32>, i32 -> vector<8x256xf32>
    %39 = vector.broadcast %34 : vector<1x256xf32> to vector<8x256xf32>
    %40 = arith.mulf %38, %39 : vector<8x256xf32>
    %41 = tpu.concatenate %37, %40 in 1 : vector<8x256xf32>, vector<8x256xf32> -> vector<8x512xf32>
    %c24 = arith.constant 24 : index
    %c0_18 = arith.constant 0 : index
    %42 = vector.load %arg8[%c24, %c0_18] : memref<72x512xf32, #tpu.memory_space<vmem>>, vector<8x512xf32>
    tpu.vector_store %arg8[%c24, %c0_18], %41 {strides = array<i32>} : memref<72x512xf32, #tpu.memory_space<vmem>>, vector<8x512xf32>,
    %43 = tpu.concatenate %3, %6 in 1 : vector<8x256xf32>, vector<8x256xf32> -> vector<8x512xf32>
    %c32 = arith.constant 32 : index
    %c0_19 = arith.constant 0 : index
    %44 = vector.load %arg8[%c32, %c0_19] : memref<72x512xf32, #tpu.memory_space<vmem>>, vector<8x512xf32>
    tpu.vector_store %arg8[%c32, %c0_19], %43 {strides = array<i32>} : memref<72x512xf32, #tpu.memory_space<vmem>>, vector<8x512xf32>,
    %c5 = arith.constant 5 : index
    %c0_20 = arith.constant 0 : index
    %45 = vector.load %arg2[%c5, %c0_20] : memref<9x256xf32, #tpu.memory_space<vmem>>, vector<1x256xf32>
    %c255_i32 = arith.constant 255 : i32
    %46 = tpu.dynamic_rotate %3 by %c255_i32 dim 1 : vector<8x256xf32>, i32 -> vector<8x256xf32>
    %47 = vector.broadcast %45 : vector<1x256xf32> to vector<8x256xf32>
    %48 = arith.mulf %46, %47 : vector<8x256xf32>
    %c255_i32_21 = arith.constant 255 : i32
    %49 = tpu.dynamic_rotate %6 by %c255_i32_21 dim 1 : vector<8x256xf32>, i32 -> vector<8x256xf32>
    %50 = vector.broadcast %45 : vector<1x256xf32> to vector<8x256xf32>
    %51 = arith.mulf %49, %50 : vector<8x256xf32>
    %52 = tpu.concatenate %48, %51 in 1 : vector<8x256xf32>, vector<8x256xf32> -> vector<8x512xf32>
    %c40 = arith.constant 40 : index
    %c0_22 = arith.constant 0 : index
    %53 = vector.load %arg8[%c40, %c0_22] : memref<72x512xf32, #tpu.memory_space<vmem>>, vector<8x512xf32>
    tpu.vector_store %arg8[%c40, %c0_22], %52 {strides = array<i32>} : memref<72x512xf32, #tpu.memory_space<vmem>>, vector<8x512xf32>,
    %c6 = arith.constant 6 : index
    %c0_23 = arith.constant 0 : index
    %54 = vector.load %arg2[%c6, %c0_23] : memref<9x256xf32, #tpu.memory_space<vmem>>, vector<1x256xf32>
    %c241_i32 = arith.constant 241 : i32
    %55 = tpu.dynamic_rotate %3 by %c241_i32 dim 1 : vector<8x256xf32>, i32 -> vector<8x256xf32>
    %56 = vector.broadcast %54 : vector<1x256xf32> to vector<8x256xf32>
    %57 = arith.mulf %55, %56 : vector<8x256xf32>
    %c241_i32_24 = arith.constant 241 : i32
    %58 = tpu.dynamic_rotate %6 by %c241_i32_24 dim 1 : vector<8x256xf32>, i32 -> vector<8x256xf32>
    %59 = vector.broadcast %54 : vector<1x256xf32> to vector<8x256xf32>
    %60 = arith.mulf %58, %59 : vector<8x256xf32>
    %61 = tpu.concatenate %57, %60 in 1 : vector<8x256xf32>, vector<8x256xf32> -> vector<8x512xf32>
    %c48 = arith.constant 48 : index
    %c0_25 = arith.constant 0 : index
    %62 = vector.load %arg8[%c48, %c0_25] : memref<72x512xf32, #tpu.memory_space<vmem>>, vector<8x512xf32>
    tpu.vector_store %arg8[%c48, %c0_25], %61 {strides = array<i32>} : memref<72x512xf32, #tpu.memory_space<vmem>>, vector<8x512xf32>,
    %c7 = arith.constant 7 : index
    %c0_26 = arith.constant 0 : index
    %63 = vector.load %arg2[%c7, %c0_26] : memref<9x256xf32, #tpu.memory_space<vmem>>, vector<1x256xf32>
    %c240_i32 = arith.constant 240 : i32
    %64 = tpu.dynamic_rotate %3 by %c240_i32 dim 1 : vector<8x256xf32>, i32 -> vector<8x256xf32>
    %65 = vector.broadcast %63 : vector<1x256xf32> to vector<8x256xf32>
    %66 = arith.mulf %64, %65 : vector<8x256xf32>
    %c240_i32_27 = arith.constant 240 : i32
    %67 = tpu.dynamic_rotate %6 by %c240_i32_27 dim 1 : vector<8x256xf32>, i32 -> vector<8x256xf32>
    %68 = vector.broadcast %63 : vector<1x256xf32> to vector<8x256xf32>
    %69 = arith.mulf %67, %68 : vector<8x256xf32>
    %70 = tpu.concatenate %66, %69 in 1 : vector<8x256xf32>, vector<8x256xf32> -> vector<8x512xf32>
    %c56 = arith.constant 56 : index
    %c0_28 = arith.constant 0 : index
    %71 = vector.load %arg8[%c56, %c0_28] : memref<72x512xf32, #tpu.memory_space<vmem>>, vector<8x512xf32>
    tpu.vector_store %arg8[%c56, %c0_28], %70 {strides = array<i32>} : memref<72x512xf32, #tpu.memory_space<vmem>>, vector<8x512xf32>,
    %c8_29 = arith.constant 8 : index
    %c0_30 = arith.constant 0 : index
    %72 = vector.load %arg2[%c8_29, %c0_30] : memref<9x256xf32, #tpu.memory_space<vmem>>, vector<1x256xf32>
    %c239_i32 = arith.constant 239 : i32
    %73 = tpu.dynamic_rotate %3 by %c239_i32 dim 1 : vector<8x256xf32>, i32 -> vector<8x256xf32>
    %74 = vector.broadcast %72 : vector<1x256xf32> to vector<8x256xf32>
    %75 = arith.mulf %73, %74 : vector<8x256xf32>
    %c239_i32_31 = arith.constant 239 : i32
    %76 = tpu.dynamic_rotate %6 by %c239_i32_31 dim 1 : vector<8x256xf32>, i32 -> vector<8x256xf32>
    %77 = vector.broadcast %72 : vector<1x256xf32> to vector<8x256xf32>
    %78 = arith.mulf %76, %77 : vector<8x256xf32>
    %79 = tpu.concatenate %75, %78 in 1 : vector<8x256xf32>, vector<8x256xf32> -> vector<8x512xf32>
    %c64 = arith.constant 64 : index
    %c0_32 = arith.constant 0 : index
    %80 = vector.load %arg8[%c64, %c0_32] : memref<72x512xf32, #tpu.memory_space<vmem>>, vector<8x512xf32>
    tpu.vector_store %arg8[%c64, %c0_32], %79 {strides = array<i32>} : memref<72x512xf32, #tpu.memory_space<vmem>>, vector<8x512xf32>,
    %c0_33 = arith.constant 0 : index
    %c0_34 = arith.constant 0 : index
    %81 = vector.load %arg3[%c0_33, %c0_34] : memref<4x72xf32, #tpu.memory_space<vmem>>, vector<4x72xf32>
    %c0_35 = arith.constant 0 : index
    %c0_36 = arith.constant 0 : index
    %82 = vector.load %arg8[%c0_35, %c0_36] : memref<72x512xf32, #tpu.memory_space<vmem>>, vector<72x512xf32>
    %cst_37 = arith.constant dense<0.000000e+00> : vector<4x512xf32>
    %83 = tpu.matmul %81, %82, %cst_37 {dimension_numbers = #tpu.dot_dimension_numbers<[1], [0], [0], [1], [0, 0, 1, 1], [], []>} : vector<4x72xf32>, vector<72x512xf32>, vector<4x512xf32> -> vector<4x512xf32>
    %c0_38 = arith.constant 0 : index
    %c0_39 = arith.constant 0 : index
    %84 = vector.load %arg4[%c0_38, %c0_39] : memref<4x1xf32, #tpu.memory_space<vmem>>, vector<4x1xf32>
    %85 = vector.broadcast %84 : vector<4x1xf32> to vector<4x512xf32>
    %86 = arith.addf %83, %85 : vector<4x512xf32>
    %cst_40 = arith.constant 0.000000e+00 : f32
    %87 = vector.broadcast %cst_40 : f32 to vector<4x512xf32>
    %88 = arith.maximumf %86, %87 : vector<4x512xf32>
    %89 = vector.extract_strided_slice %88 {offsets = [0, 0], sizes = [4, 256], strides = [1, 1]} : vector<4x512xf32> to vector<4x256xf32>
    %90 = tpu.concatenate %89, %0 in 0 : vector<4x256xf32>, vector<4x256xf32> -> vector<8x256xf32>
    %91 = vector.extract_strided_slice %88 {offsets = [0, 256], sizes = [4, 256], strides = [1, 1]} : vector<4x512xf32> to vector<4x256xf32>
    %92 = tpu.concatenate %91, %0 in 0 : vector<4x256xf32>, vector<4x256xf32> -> vector<8x256xf32>
    %c0_41 = arith.constant 0 : index
    %c0_42 = arith.constant 0 : index
    %93 = vector.load %arg2[%c0_41, %c0_42] : memref<9x256xf32, #tpu.memory_space<vmem>>, vector<1x256xf32>
    %c17_i32_43 = arith.constant 17 : i32
    %94 = tpu.dynamic_rotate %90 by %c17_i32_43 dim 1 : vector<8x256xf32>, i32 -> vector<8x256xf32>
    %95 = vector.broadcast %93 : vector<1x256xf32> to vector<8x256xf32>
    %96 = arith.mulf %94, %95 : vector<8x256xf32>
    %c17_i32_44 = arith.constant 17 : i32
    %97 = tpu.dynamic_rotate %92 by %c17_i32_44 dim 1 : vector<8x256xf32>, i32 -> vector<8x256xf32>
    %98 = vector.broadcast %93 : vector<1x256xf32> to vector<8x256xf32>
    %99 = arith.mulf %97, %98 : vector<8x256xf32>
    %100 = tpu.concatenate %96, %99 in 1 : vector<8x256xf32>, vector<8x256xf32> -> vector<8x512xf32>
    %c0_45 = arith.constant 0 : index
    %c0_46 = arith.constant 0 : index
    %101 = vector.load %arg8[%c0_45, %c0_46] : memref<72x512xf32, #tpu.memory_space<vmem>>, vector<8x512xf32>
    tpu.vector_store %arg8[%c0_45, %c0_46], %100 {strides = array<i32>} : memref<72x512xf32, #tpu.memory_space<vmem>>, vector<8x512xf32>,
    %c1_47 = arith.constant 1 : index
    %c0_48 = arith.constant 0 : index
    %102 = vector.load %arg2[%c1_47, %c0_48] : memref<9x256xf32, #tpu.memory_space<vmem>>, vector<1x256xf32>
    %c16_i32_49 = arith.constant 16 : i32
    %103 = tpu.dynamic_rotate %90 by %c16_i32_49 dim 1 : vector<8x256xf32>, i32 -> vector<8x256xf32>
    %104 = vector.broadcast %102 : vector<1x256xf32> to vector<8x256xf32>
    %105 = arith.mulf %103, %104 : vector<8x256xf32>
    %c16_i32_50 = arith.constant 16 : i32
    %106 = tpu.dynamic_rotate %92 by %c16_i32_50 dim 1 : vector<8x256xf32>, i32 -> vector<8x256xf32>
    %107 = vector.broadcast %102 : vector<1x256xf32> to vector<8x256xf32>
    %108 = arith.mulf %106, %107 : vector<8x256xf32>
    %109 = tpu.concatenate %105, %108 in 1 : vector<8x256xf32>, vector<8x256xf32> -> vector<8x512xf32>
    %c8_51 = arith.constant 8 : index
    %c0_52 = arith.constant 0 : index
    %110 = vector.load %arg8[%c8_51, %c0_52] : memref<72x512xf32, #tpu.memory_space<vmem>>, vector<8x512xf32>
    tpu.vector_store %arg8[%c8_51, %c0_52], %109 {strides = array<i32>} : memref<72x512xf32, #tpu.memory_space<vmem>>, vector<8x512xf32>,
    %c2_53 = arith.constant 2 : index
    %c0_54 = arith.constant 0 : index
    %111 = vector.load %arg2[%c2_53, %c0_54] : memref<9x256xf32, #tpu.memory_space<vmem>>, vector<1x256xf32>
    %c15_i32_55 = arith.constant 15 : i32
    %112 = tpu.dynamic_rotate %90 by %c15_i32_55 dim 1 : vector<8x256xf32>, i32 -> vector<8x256xf32>
    %113 = vector.broadcast %111 : vector<1x256xf32> to vector<8x256xf32>
    %114 = arith.mulf %112, %113 : vector<8x256xf32>
    %c15_i32_56 = arith.constant 15 : i32
    %115 = tpu.dynamic_rotate %92 by %c15_i32_56 dim 1 : vector<8x256xf32>, i32 -> vector<8x256xf32>
    %116 = vector.broadcast %111 : vector<1x256xf32> to vector<8x256xf32>
    %117 = arith.mulf %115, %116 : vector<8x256xf32>
    %118 = tpu.concatenate %114, %117 in 1 : vector<8x256xf32>, vector<8x256xf32> -> vector<8x512xf32>
    %c16_57 = arith.constant 16 : index
    %c0_58 = arith.constant 0 : index
    %119 = vector.load %arg8[%c16_57, %c0_58] : memref<72x512xf32, #tpu.memory_space<vmem>>, vector<8x512xf32>
    tpu.vector_store %arg8[%c16_57, %c0_58], %118 {strides = array<i32>} : memref<72x512xf32, #tpu.memory_space<vmem>>, vector<8x512xf32>,
    %c3_59 = arith.constant 3 : index
    %c0_60 = arith.constant 0 : index
    %120 = vector.load %arg2[%c3_59, %c0_60] : memref<9x256xf32, #tpu.memory_space<vmem>>, vector<1x256xf32>
    %c1_i32_61 = arith.constant 1 : i32
    %121 = tpu.dynamic_rotate %90 by %c1_i32_61 dim 1 : vector<8x256xf32>, i32 -> vector<8x256xf32>
    %122 = vector.broadcast %120 : vector<1x256xf32> to vector<8x256xf32>
    %123 = arith.mulf %121, %122 : vector<8x256xf32>
    %c1_i32_62 = arith.constant 1 : i32
    %124 = tpu.dynamic_rotate %92 by %c1_i32_62 dim 1 : vector<8x256xf32>, i32 -> vector<8x256xf32>
    %125 = vector.broadcast %120 : vector<1x256xf32> to vector<8x256xf32>
    %126 = arith.mulf %124, %125 : vector<8x256xf32>
    %127 = tpu.concatenate %123, %126 in 1 : vector<8x256xf32>, vector<8x256xf32> -> vector<8x512xf32>
    %c24_63 = arith.constant 24 : index
    %c0_64 = arith.constant 0 : index
    %128 = vector.load %arg8[%c24_63, %c0_64] : memref<72x512xf32, #tpu.memory_space<vmem>>, vector<8x512xf32>
    tpu.vector_store %arg8[%c24_63, %c0_64], %127 {strides = array<i32>} : memref<72x512xf32, #tpu.memory_space<vmem>>, vector<8x512xf32>,
    %129 = tpu.concatenate %90, %92 in 1 : vector<8x256xf32>, vector<8x256xf32> -> vector<8x512xf32>
    %c32_65 = arith.constant 32 : index
    %c0_66 = arith.constant 0 : index
    %130 = vector.load %arg8[%c32_65, %c0_66] : memref<72x512xf32, #tpu.memory_space<vmem>>, vector<8x512xf32>
    tpu.vector_store %arg8[%c32_65, %c0_66], %129 {strides = array<i32>} : memref<72x512xf32, #tpu.memory_space<vmem>>, vector<8x512xf32>,
    %c5_67 = arith.constant 5 : index
    %c0_68 = arith.constant 0 : index
    %131 = vector.load %arg2[%c5_67, %c0_68] : memref<9x256xf32, #tpu.memory_space<vmem>>, vector<1x256xf32>
    %c255_i32_69 = arith.constant 255 : i32
    %132 = tpu.dynamic_rotate %90 by %c255_i32_69 dim 1 : vector<8x256xf32>, i32 -> vector<8x256xf32>
    %133 = vector.broadcast %131 : vector<1x256xf32> to vector<8x256xf32>
    %134 = arith.mulf %132, %133 : vector<8x256xf32>
    %c255_i32_70 = arith.constant 255 : i32
    %135 = tpu.dynamic_rotate %92 by %c255_i32_70 dim 1 : vector<8x256xf32>, i32 -> vector<8x256xf32>
    %136 = vector.broadcast %131 : vector<1x256xf32> to vector<8x256xf32>
    %137 = arith.mulf %135, %136 : vector<8x256xf32>
    %138 = tpu.concatenate %134, %137 in 1 : vector<8x256xf32>, vector<8x256xf32> -> vector<8x512xf32>
    %c40_71 = arith.constant 40 : index
    %c0_72 = arith.constant 0 : index
    %139 = vector.load %arg8[%c40_71, %c0_72] : memref<72x512xf32, #tpu.memory_space<vmem>>, vector<8x512xf32>
    tpu.vector_store %arg8[%c40_71, %c0_72], %138 {strides = array<i32>} : memref<72x512xf32, #tpu.memory_space<vmem>>, vector<8x512xf32>,
    %c6_73 = arith.constant 6 : index
    %c0_74 = arith.constant 0 : index
    %140 = vector.load %arg2[%c6_73, %c0_74] : memref<9x256xf32, #tpu.memory_space<vmem>>, vector<1x256xf32>
    %c241_i32_75 = arith.constant 241 : i32
    %141 = tpu.dynamic_rotate %90 by %c241_i32_75 dim 1 : vector<8x256xf32>, i32 -> vector<8x256xf32>
    %142 = vector.broadcast %140 : vector<1x256xf32> to vector<8x256xf32>
    %143 = arith.mulf %141, %142 : vector<8x256xf32>
    %c241_i32_76 = arith.constant 241 : i32
    %144 = tpu.dynamic_rotate %92 by %c241_i32_76 dim 1 : vector<8x256xf32>, i32 -> vector<8x256xf32>
    %145 = vector.broadcast %140 : vector<1x256xf32> to vector<8x256xf32>
    %146 = arith.mulf %144, %145 : vector<8x256xf32>
    %147 = tpu.concatenate %143, %146 in 1 : vector<8x256xf32>, vector<8x256xf32> -> vector<8x512xf32>
    %c48_77 = arith.constant 48 : index
    %c0_78 = arith.constant 0 : index
    %148 = vector.load %arg8[%c48_77, %c0_78] : memref<72x512xf32, #tpu.memory_space<vmem>>, vector<8x512xf32>
    tpu.vector_store %arg8[%c48_77, %c0_78], %147 {strides = array<i32>} : memref<72x512xf32, #tpu.memory_space<vmem>>, vector<8x512xf32>,
    %c7_79 = arith.constant 7 : index
    %c0_80 = arith.constant 0 : index
    %149 = vector.load %arg2[%c7_79, %c0_80] : memref<9x256xf32, #tpu.memory_space<vmem>>, vector<1x256xf32>
    %c240_i32_81 = arith.constant 240 : i32
    %150 = tpu.dynamic_rotate %90 by %c240_i32_81 dim 1 : vector<8x256xf32>, i32 -> vector<8x256xf32>
    %151 = vector.broadcast %149 : vector<1x256xf32> to vector<8x256xf32>
    %152 = arith.mulf %150, %151 : vector<8x256xf32>
    %c240_i32_82 = arith.constant 240 : i32
    %153 = tpu.dynamic_rotate %92 by %c240_i32_82 dim 1 : vector<8x256xf32>, i32 -> vector<8x256xf32>
    %154 = vector.broadcast %149 : vector<1x256xf32> to vector<8x256xf32>
    %155 = arith.mulf %153, %154 : vector<8x256xf32>
    %156 = tpu.concatenate %152, %155 in 1 : vector<8x256xf32>, vector<8x256xf32> -> vector<8x512xf32>
    %c56_83 = arith.constant 56 : index
    %c0_84 = arith.constant 0 : index
    %157 = vector.load %arg8[%c56_83, %c0_84] : memref<72x512xf32, #tpu.memory_space<vmem>>, vector<8x512xf32>
    tpu.vector_store %arg8[%c56_83, %c0_84], %156 {strides = array<i32>} : memref<72x512xf32, #tpu.memory_space<vmem>>, vector<8x512xf32>,
    %c8_85 = arith.constant 8 : index
    %c0_86 = arith.constant 0 : index
    %158 = vector.load %arg2[%c8_85, %c0_86] : memref<9x256xf32, #tpu.memory_space<vmem>>, vector<1x256xf32>
    %c239_i32_87 = arith.constant 239 : i32
    %159 = tpu.dynamic_rotate %90 by %c239_i32_87 dim 1 : vector<8x256xf32>, i32 -> vector<8x256xf32>
    %160 = vector.broadcast %158 : vector<1x256xf32> to vector<8x256xf32>
    %161 = arith.mulf %159, %160 : vector<8x256xf32>
    %c239_i32_88 = arith.constant 239 : i32
    %162 = tpu.dynamic_rotate %92 by %c239_i32_88 dim 1 : vector<8x256xf32>, i32 -> vector<8x256xf32>
    %163 = vector.broadcast %158 : vector<1x256xf32> to vector<8x256xf32>
    %164 = arith.mulf %162, %163 : vector<8x256xf32>
    %165 = tpu.concatenate %161, %164 in 1 : vector<8x256xf32>, vector<8x256xf32> -> vector<8x512xf32>
    %c64_89 = arith.constant 64 : index
    %c0_90 = arith.constant 0 : index
    %166 = vector.load %arg8[%c64_89, %c0_90] : memref<72x512xf32, #tpu.memory_space<vmem>>, vector<8x512xf32>
    tpu.vector_store %arg8[%c64_89, %c0_90], %165 {strides = array<i32>} : memref<72x512xf32, #tpu.memory_space<vmem>>, vector<8x512xf32>,
    %c0_91 = arith.constant 0 : index
    %c0_92 = arith.constant 0 : index
    %167 = vector.load %arg5[%c0_91, %c0_92] : memref<4x72xf32, #tpu.memory_space<vmem>>, vector<4x72xf32>
    %c0_93 = arith.constant 0 : index
    %c0_94 = arith.constant 0 : index
    %168 = vector.load %arg8[%c0_93, %c0_94] : memref<72x512xf32, #tpu.memory_space<vmem>>, vector<72x512xf32>
    %cst_95 = arith.constant dense<0.000000e+00> : vector<4x512xf32>
    %169 = tpu.matmul %167, %168, %cst_95 {dimension_numbers = #tpu.dot_dimension_numbers<[1], [0], [0], [1], [0, 0, 1, 1], [], []>} : vector<4x72xf32>, vector<72x512xf32>, vector<4x512xf32> -> vector<4x512xf32>
    %c0_96 = arith.constant 0 : index
    %c0_97 = arith.constant 0 : index
    %170 = vector.load %arg6[%c0_96, %c0_97] : memref<4x1xf32, #tpu.memory_space<vmem>>, vector<4x1xf32>
    %171 = vector.broadcast %170 : vector<4x1xf32> to vector<4x512xf32>
    %172 = arith.addf %169, %171 : vector<4x512xf32>
    %173 = vector.extract_strided_slice %172 {offsets = [0, 0], sizes = [4, 256], strides = [1, 1]} : vector<4x512xf32> to vector<4x256xf32>
    %c0_98 = arith.constant 0 : index
    %c0_99 = arith.constant 0 : index
    %c0_100 = arith.constant 0 : index
    %174 = vector.load %arg1[%c0_98, %c0_99, %c0_100] : memref<2x4x256xf32, #tpu.memory_space<vmem>>, vector<1x4x256xf32>
    %175 = vector.shape_cast %174 : vector<1x4x256xf32> to vector<4x256xf32>
    %176 = arith.addf %173, %175 : vector<4x256xf32>
    %cst_101 = arith.constant 0.000000e+00 : f32
    %177 = vector.broadcast %cst_101 : f32 to vector<4x256xf32>
    %178 = arith.maximumf %176, %177 : vector<4x256xf32>
    %c0_102 = arith.constant 0 : index
    %c0_103 = arith.constant 0 : index
    %c0_104 = arith.constant 0 : index
    %179 = vector.load %arg7[%c0_102, %c0_103, %c0_104] : memref<2x4x256xf32, #tpu.memory_space<vmem>>, vector<1x4x256xf32>
    %180 = vector.shape_cast %179 : vector<1x4x256xf32> to vector<4x256xf32>
    %181 = vector.shape_cast %178 : vector<4x256xf32> to vector<1x4x256xf32>
    tpu.vector_store %arg7[%c0_102, %c0_103, %c0_104], %181 {strides = array<i32>} : memref<2x4x256xf32, #tpu.memory_space<vmem>>, vector<1x4x256xf32>,
    %182 = vector.extract_strided_slice %172 {offsets = [0, 256], sizes = [4, 256], strides = [1, 1]} : vector<4x512xf32> to vector<4x256xf32>
    %c1_105 = arith.constant 1 : index
    %c0_106 = arith.constant 0 : index
    %c0_107 = arith.constant 0 : index
    %183 = vector.load %arg1[%c1_105, %c0_106, %c0_107] : memref<2x4x256xf32, #tpu.memory_space<vmem>>, vector<1x4x256xf32>
    %184 = vector.shape_cast %183 : vector<1x4x256xf32> to vector<4x256xf32>
    %185 = arith.addf %182, %184 : vector<4x256xf32>
    %cst_108 = arith.constant 0.000000e+00 : f32
    %186 = vector.broadcast %cst_108 : f32 to vector<4x256xf32>
    %187 = arith.maximumf %185, %186 : vector<4x256xf32>
    %c1_109 = arith.constant 1 : index
    %c0_110 = arith.constant 0 : index
    %c0_111 = arith.constant 0 : index
    %188 = vector.load %arg7[%c1_109, %c0_110, %c0_111] : memref<2x4x256xf32, #tpu.memory_space<vmem>>, vector<1x4x256xf32>
    %189 = vector.shape_cast %188 : vector<1x4x256xf32> to vector<4x256xf32>
    %190 = vector.shape_cast %187 : vector<4x256xf32> to vector<1x4x256xf32>
    tpu.vector_store %arg7[%c1_109, %c0_110, %c0_111], %190 {strides = array<i32>} : memref<2x4x256xf32, #tpu.memory_space<vmem>>, vector<1x4x256xf32>,
    return
  }
  func.func @transform_0(%arg0: i32) -> (i32, i32, i32) {
    %c0_i32 = arith.constant 0 : i32
    %c0_i32_0 = arith.constant 0 : i32
    %c0_i32_1 = arith.constant 0 : i32
    return %arg0, %c0_i32, %c0_i32_0 : i32, i32, i32
  }
  func.func @transform_1(%arg0: i32) -> (i32, i32) {
    %c0_i32 = arith.constant 0 : i32
    %c0_i32_0 = arith.constant 0 : i32
    %c0_i32_1 = arith.constant 0 : i32
    return %c0_i32, %c0_i32_0 : i32, i32
  }
  func.func @transform_2(%arg0: i32) -> (i32, i32) {
    %c0_i32 = arith.constant 0 : i32
    %c0_i32_0 = arith.constant 0 : i32
    %c0_i32_1 = arith.constant 0 : i32
    return %c0_i32, %c0_i32_0 : i32, i32
  }
  func.func @transform_3(%arg0: i32) -> (i32, i32) {
    %c0_i32 = arith.constant 0 : i32
    %c0_i32_0 = arith.constant 0 : i32
    %c0_i32_1 = arith.constant 0 : i32
    return %c0_i32, %c0_i32_0 : i32, i32
  }
  func.func @transform_4(%arg0: i32) -> (i32, i32) {
    %c0_i32 = arith.constant 0 : i32
    %c0_i32_0 = arith.constant 0 : i32
    %c0_i32_1 = arith.constant 0 : i32
    return %c0_i32, %c0_i32_0 : i32, i32
  }
  func.func @transform_5(%arg0: i32) -> (i32, i32) {
    %c0_i32 = arith.constant 0 : i32
    %c0_i32_0 = arith.constant 0 : i32
    %c0_i32_1 = arith.constant 0 : i32
    return %c0_i32, %c0_i32_0 : i32, i32
  }
  func.func @transform_6(%arg0: i32) -> (i32, i32, i32) {
    %c0_i32 = arith.constant 0 : i32
    %c0_i32_0 = arith.constant 0 : i32
    %c0_i32_1 = arith.constant 0 : i32
    return %arg0, %c0_i32, %c0_i32_0 : i32, i32, i32
  }
}

</mosaic_0001>

<bundles_post_ra>
// kernel: residual_block.1
= control target key start
LH: loop header
LB: loop body
LE: loop exit
PB: predicated region body
PF: predicated region fallthrough
CT: control target
= control target key end

     0   :  { %vm27_vm0 = vcmask 1043456   ;;  %s1105_s25 = smov 17   ;;  %s1107_s26 = smov 15   ;;  %v1111_v8 = vmov 0.0   ;;  %v1113_v9 = vmov 0   ;;  %v42_v11 = vlaneseq  ;;  %s1550_s0 = inlined_call_operand.vmem [shape: f32[2,4,256], index: 0, kind: input, shape index: {}]   ;;  %s1551_s3 = inlined_call_operand.vmem [shape: f32[4,1], index: 3, kind: input, shape index: {}]   ;;  %s1552_s1 = inlined_call_operand.vmem [shape: f32[9,256], index: 1, kind: input, shape index: {}]   ;;  %s1553_s2 = inlined_call_operand.vmem [shape: f32[4,72], index: 2, kind: input, shape index: {}]   ;;  %s1554_s5 = inlined_call_operand.vmem [shape: f32[4,1], index: 5, kind: input, shape index: {}]   ;;  %s1555_s4 = inlined_call_operand.vmem [shape: f32[4,72], index: 4, kind: input, shape index: {}]   ;;  %s1556_s6 = inlined_call_operand.vmem [shape: f32[2,4,256], index: 6, kind: output, shape index: {}]  }
   0x1   :  { %v1154_v0 = vld [vmem:[%s1550_s0 + $0x8] sm:$0xff]  ;;  %v1159_v1 = vld [vmem:[%s1550_s0] sm:$0xff]  ;;  %s1106_s0 = smov 16   ;;  %s1108_s27 = smov 1   ;;  %425 = vmatprep.mubr.f32.mxu0 %v1111_v8  ;;  %496 = vmatprep.mubr.f32.mxu1 %v1111_v8  ;;  %vm1115_vm6 = vmmov 1   ;;  %vm357_vm11 = vcmask 588800  }
   0x2   :  { %v35_v2 = vsel %vm27_vm0, %v1154_v0, 0.0  ;;  %v28_v3 = vsel %vm27_vm0, %v1159_v1, 0.0  ;;  %v1167_v4 = vcombine.high %v1154_v0, %v1154_v0  ;;  %v1171_v5 = vcombine.high %v1159_v1, %v1159_v1  ;;  %s1109_s28 = smov 127   ;;  %s1110_s29 = smov 113   ;;  %1102 = vset.pattern.permute.xlu0 %v1113_v9  ;;  %v351_v10 = vld [vmem:[%s1551_s3] sm:$0xf]  ;;  %vm1287_vm7 = vmpackc.low %vm1115_vm6, %vm27_vm0 }
   0x3   :  { %60 = vrot.lane.b32.xlu1 %v35_v2, %s1105_s25  ;;  %38 = vrot.lane.b32.xlu0 %v28_v3, %s1105_s25  ;;  %s1112_s30 = smov 112   ;;  %s1114_s7 = smov 111   ;;  %v49_v12 = vshrl.u32 %v42_v11, 7  ;;  %v1214_v15 = vand.u32 127, %v42_v11 }
   0x4   :  { %v36_v6 = vsel %vm27_vm0, %v1167_v4, 0.0  ;;  %v29_v7 = vsel %vm27_vm0, %v1171_v5, 0.0  ;;  %v37_v18 = vld [vmem:[%s1552_s1] ss:$8 sm:$0x3] }
   0x5   :  { %v1216_v16 = vsub.s32 0, %v49_v12  ;;  %v1218_v17 = vsub.s32 1, %v49_v12  ;;  %v991_v19 = vld [vmem:[%s1552_s1 + $0x1] ss:$8 sm:$0x3]  ;;  %vm44_vm1 = vcmp.lt.s32.totalorder %v1214_v15, 17 }
   0x6   :  { %vm78_vm2 = vcmp.lt.s32.totalorder %v1214_v15, 16  ;;  %v992_v52 = vld [vmem:[%s1552_s1 + $0x2] ss:$8 sm:$0x3]  ;;  %vm112_vm3 = vcmp.lt.s32.totalorder %v1214_v15, 15  ;;  %vm146_vm4 = vcmp.lt.s32.totalorder %v1214_v15, 1 }
   0x7   :  { %62 = vrot.lane.b32.xlu1 %v36_v6, %s1105_s25  ;;  %40 = vrot.lane.b32.xlu0 %v29_v7, %s1105_s25  ;;  %v51_v22 = vrot.slane %v37_v18, %v1216_v16  ;;  %v85_v23 = vrot.slane %v991_v19, %v1216_v16  ;;  %v55_v24 = vrot.slane %v37_v18, %v1218_v17  ;;  %v993_v53 = vld [vmem:[%s1552_s1 + $0x3] ss:$8 sm:$0x3]  ;;  %v994_v11 = vld [vmem:[%s1552_s1 + $0x5] ss:$8 sm:$0x3] }
   0x8   :  { %v89_v25 = vrot.slane %v991_v19, %v1218_v17  ;;  %v119_v56 = vrot.slane %v992_v52, %v1216_v16  ;;  %v123_v57 = vrot.slane %v992_v52, %v1218_v17  ;;  %v153_v58 = vrot.slane %v993_v53, %v1216_v16 }
   0x9   :  { %v157_v59 = vrot.slane %v993_v53, %v1218_v17  ;;  %vm184_vm5 = vcmp.lt.s32.totalorder %v1214_v15, 127  ;;  %vm218_vm8 = vcmp.lt.s32.totalorder %v1214_v15, 113  ;;  %vm252_vm9 = vcmp.lt.s32.totalorder %v1214_v15, 112 }
   0xa   :  { %vm286_vm10 = vcmp.lt.s32.totalorder %v1214_v15, 111 }
   0xb   :  { %76 = vrot.lane.b32.xlu1 %v29_v7, %s1106_s0  ;;  %74 = vrot.lane.b32.xlu0 %v28_v3, %s1106_s0 }
   0xf   :  { %96 = vrot.lane.b32.xlu1 %v36_v6, %s1106_s0  ;;  %94 = vrot.lane.b32.xlu0 %v35_v2, %s1106_s0 }
  0x13   :  { %110 = vrot.lane.b32.xlu1 %v29_v7, %s1107_s26  ;;  %108 = vrot.lane.b32.xlu0 %v28_v3, %s1107_s26 }
  0x17   :  { %130 = vrot.lane.b32.xlu1 %v36_v6, %s1107_s26  ;;  %128 = vrot.lane.b32.xlu0 %v35_v2, %s1107_s26 }
  0x1b   :  { %144 = vrot.lane.b32.xlu1 %v29_v7, %s1108_s27  ;;  %142 = vrot.lane.b32.xlu0 %v28_v3, %s1108_s27 }
  0x1f   :  { %164 = vrot.lane.b32.xlu1 %v36_v6, %s1108_s27  ;;  %162 = vrot.lane.b32.xlu0 %v35_v2, %s1108_s27 }
  0x23   :  { %182 = vrot.lane.b32.xlu1 %v29_v7, %s1109_s28  ;;  %180 = vrot.lane.b32.xlu0 %v28_v3, %s1109_s28 }
  0x27   :  { %202 = vrot.lane.b32.xlu1 %v36_v6, %s1109_s28  ;;  %200 = vrot.lane.b32.xlu0 %v35_v2, %s1109_s28 }
  0x2b   :  { %216 = vrot.lane.b32.xlu1 %v29_v7, %s1110_s29  ;;  %214 = vrot.lane.b32.xlu0 %v28_v3, %s1110_s29 }
  0x2f   :  { %236 = vrot.lane.b32.xlu1 %v36_v6, %s1110_s29  ;;  %234 = vrot.lane.b32.xlu0 %v35_v2, %s1110_s29 }
  0x33   :  { %250 = vrot.lane.b32.xlu1 %v29_v7, %s1112_s30  ;;  %248 = vrot.lane.b32.xlu0 %v28_v3, %s1112_s30 }
  0x37   :  { %270 = vrot.lane.b32.xlu1 %v36_v6, %s1112_s30  ;;  %268 = vrot.lane.b32.xlu0 %v35_v2, %s1112_s30 }
  0x3b   :  { %284 = vrot.lane.b32.xlu1 %v29_v7, %s1114_s7  ;;  %282 = vrot.lane.b32.xlu0 %v28_v3, %s1114_s7 }
  0x3f   :  { %304 = vrot.lane.b32.xlu1 %v36_v6, %s1114_s7  ;;  %302 = vrot.lane.b32.xlu0 %v35_v2, %s1114_s7 }
  0x43   :  { %354 = vperm.xlu0 %1102, %v351_v10  }
  0x75   :  { %v61_v13 = vpop.permute.xlu1 %60  ;;  %v39_v14 = vpop.permute.xlu0 %38 }
  0x79   :  { %v63_v20 = vpop.permute.xlu1 %62  ;;  %v41_v21 = vpop.permute.xlu0 %40 }
  0x7a   :  { %v45_v26 = vsel %vm44_vm1, %v39_v14, %v41_v21  ;;  %v46_v27 = vsel %vm44_vm1, %v41_v21, %v39_v14  ;;  %v64_v36 = vsel %vm44_vm1, %v61_v13, %v63_v20  ;;  %v65_v37 = vsel %vm44_vm1, %v63_v20, %v61_v13 }
  0x7b   :  { %v58_v32 = vmul.f32 %v51_v22, %v46_v27  ;;  %v59_v34 = vmul.f32 %v55_v24, %v45_v26  ;;  %v66_v44 = vmul.f32 %v65_v37, %v51_v22  ;;  %v67_v46 = vmul.f32 %v64_v36, %v55_v24 }
  0x7c   :  { %v195_v24 = vrot.slane %v994_v11, %v1218_v17 }
  0x7d   :  { %v77_v28 = vpop.permute.xlu1 %76  ;;  %v75_v29 = vpop.permute.xlu0 %74 }
  0x7e   :  { %v79_v30 = vsel %vm78_vm2, %v75_v29, %v77_v28  ;;  %v80_v31 = vsel %vm78_vm2, %v77_v28, %v75_v29 }
  0x7f   :  { %v92_v33 = vmul.f32 %v85_v23, %v80_v31  ;;  %v93_v35 = vmul.f32 %v89_v25, %v79_v30 }
  0x81   :  { %v97_v38 = vpop.permute.xlu1 %96  ;;  %v95_v39 = vpop.permute.xlu0 %94  ;;  %v1019_v40 = vpack.c.bf16 %v93_v35, %v59_v34  ;;  %v1021_v41 = vpack.c.bf16 %v92_v33, %v58_v32 }
  0x82   :  { %v98_v42 = vsel %vm78_vm2, %v95_v39, %v97_v38  ;;  %v99_v43 = vsel %vm78_vm2, %v97_v38, %v95_v39 }
  0x83   :  { %v100_v45 = vmul.f32 %v99_v43, %v85_v23  ;;  %1020 = vmatprep.subr.bf16.mxu0 %v1019_v40  ;;  %v101_v47 = vmul.f32 %v98_v42, %v89_v25  ;;  %v191_v23 = vrot.slane %v994_v11, %v1216_v16 }
  0x84   :  { %1022 = vmatpush1.bf16.msra.mxu0 %v1021_v41 }
  0x85   :  { %v111_v48 = vpop.permute.xlu1 %110  ;;  %v109_v49 = vpop.permute.xlu0 %108  ;;  %v1037_v50 = vpack.c.bf16 %v101_v47, %v67_v46  ;;  %v1039_v51 = vpack.c.bf16 %v100_v45, %v66_v44 }
  0x86   :  { %v113_v60 = vsel %vm112_vm3, %v109_v49, %v111_v48  ;;  %v114_v61 = vsel %vm112_vm3, %v111_v48, %v109_v49 }
  0x87   :  { %1038 = vmatprep.subr.bf16.mxu1 %v1037_v50  ;;  %v126_v6 = vmul.f32 %v119_v56, %v114_v61  ;;  %v127_v7 = vmul.f32 %v123_v57, %v113_v60  ;;  %v995_v50 = vld [vmem:[%s1552_s1 + $0x6] ss:$8 sm:$0x3] }
  0x88   :  { %1040 = vmatpush1.bf16.msra.mxu1 %v1039_v51  ;;  %v996_v51 = vld [vmem:[%s1552_s1 + $0x7] ss:$8 sm:$0x3] }
  0x89   :  { %v131_v54 = vpop.permute.xlu1 %130  ;;  %v129_v55 = vpop.permute.xlu0 %128 }
  0x8a   :  { %v132_v12 = vsel %vm112_vm3, %v129_v55, %v131_v54  ;;  %v133_v13 = vsel %vm112_vm3, %v131_v54, %v129_v55  ;;  %v225_v54 = vrot.slane %v995_v50, %v1216_v16  ;;  %v229_v55 = vrot.slane %v995_v50, %v1218_v17 }
  0x8b   :  { %v134_v25 = vmul.f32 %v133_v13, %v119_v56  ;;  %v135_v26 = vmul.f32 %v132_v12, %v123_v57  ;;  %v259_v56 = vrot.slane %v996_v51, %v1216_v16  ;;  %v263_v57 = vrot.slane %v996_v51, %v1218_v17 }
  0x8d   :  { %v145_v62 = vpop.permute.xlu1 %144  ;;  %v143_v63 = vpop.permute.xlu0 %142 }
  0x8e   :  { %v147_v2 = vsel %vm146_vm4, %v143_v63, %v145_v62  ;;  %v148_v3 = vsel %vm146_vm4, %v145_v62, %v143_v63 }
  0x8f   :  { %v160_v9 = vmul.f32 %v153_v58, %v148_v3  ;;  %v161_v10 = vmul.f32 %v157_v59, %v147_v2 }
  0x91   :  { %v165_v14 = vpop.permute.xlu1 %164  ;;  %v163_v18 = vpop.permute.xlu0 %162  ;;  %v1023_v19 = vpack.c.bf16 %v161_v10, %v127_v7  ;;  %v1025_v20 = vpack.c.bf16 %v160_v9, %v126_v6  ;;  %v997_v9 = vld [vmem:[%s1552_s1 + $0x10] ss:$8 sm:$0x3] }
  0x92   :  { %v166_v21 = vsel %vm146_vm4, %v163_v18, %v165_v14  ;;  %v167_v22 = vsel %vm146_vm4, %v165_v14, %v163_v18 }
  0x93   :  { %v168_v27 = vmul.f32 %v167_v22, %v153_v58  ;;  %v169_v28 = vmul.f32 %v166_v21, %v157_v59  ;;  %1024 = vmatprep.subr.bf16.mxu0 %v1023_v19  ;;  %v293_v21 = vrot.slane %v997_v9, %v1216_v16  ;;  %v297_v22 = vrot.slane %v997_v9, %v1218_v17 }
  0x94   :  { %1026 = vmatpush1.bf16.msra.mxu0 %v1025_v20 }
  0x95   :  { %v183_v29 = vpop.permute.xlu1 %182  ;;  %v181_v30 = vpop.permute.xlu0 %180  ;;  %v1041_v31 = vpack.c.bf16 %v169_v28, %v135_v26  ;;  %v1043_v32 = vpack.c.bf16 %v168_v27, %v134_v25 }
  0x96   :  { %v185_v33 = vsel %vm184_vm5, %v181_v30, %v183_v29  ;;  %v186_v34 = vsel %vm184_vm5, %v183_v29, %v181_v30 }
  0x97   :  { %v198_v35 = vmul.f32 %v191_v23, %v185_v33  ;;  %v199_v36 = vmul.f32 %v195_v24, %v186_v34  ;;  %1042 = vmatprep.subr.bf16.mxu1 %v1041_v31 }
  0x98   :  { %1044 = vmatpush1.bf16.msra.mxu1 %v1043_v32 }
  0x99   :  { %v1027_v38 = vpack.c.bf16 %v199_v36, %v1171_v5  ;;  %v1030_v39 = vpack.c.bf16 %v198_v35, %v1159_v1  ;;  %v203_v40 = vpop.permute.xlu1 %202  ;;  %v201_v41 = vpop.permute.xlu0 %200  ;;  %v314_v35 = vld [vmem:[%s1553_s2] sm:$0xf] }
  0x9a   :  { %v204_v42 = vsel %vm184_vm5, %v201_v41, %v203_v40  ;;  %v205_v43 = vsel %vm184_vm5, %v203_v40, %v201_v41 }
  0x9b   :  { %v206_v44 = vmul.f32 %v204_v42, %v191_v23  ;;  %v207_v45 = vmul.f32 %v205_v43, %v195_v24  ;;  %1029 = vmatprep.subr.msk.bf16.mxu0 %vm1287_vm7, %v1027_v38 }
  0x9c   :  { %1032 = vmatpush1.bf16.msk.msra.mxu0 %vm1287_vm7, %v1030_v39 }
  0x9d   :  { %v1045_v46 = vpack.c.bf16 %v207_v45, %v1167_v4  ;;  %v1048_v47 = vpack.c.bf16 %v206_v44, %v1154_v0  ;;  %v217_v48 = vpop.permute.xlu1 %216  ;;  %v215_v49 = vpop.permute.xlu0 %214 }
  0x9e   :  { %v219_v58 = vsel %vm218_vm8, %v215_v49, %v217_v48  ;;  %v220_v59 = vsel %vm218_vm8, %v217_v48, %v215_v49 }
  0x9f   :  { %1047 = vmatprep.subr.msk.bf16.mxu1 %vm1287_vm7, %v1045_v46  ;;  %v232_v2 = vmul.f32 %v225_v54, %v219_v58  ;;  %v233_v3 = vmul.f32 %v229_v55, %v220_v59  ;;  %v808_v59 = vld [vmem:[%s1554_s5] sm:$0xf] }
  0xa0   :  { %1050 = vmatpush1.bf16.msk.msra.mxu1 %vm1287_vm7, %v1048_v47 }
  0xa1   :  { %v237_v52 = vpop.permute.xlu1 %236  ;;  %v235_v53 = vpop.permute.xlu0 %234 }
  0xa2   :  { %v238_v10 = vsel %vm218_vm8, %v235_v53, %v237_v52  ;;  %v239_v11 = vsel %vm218_vm8, %v237_v52, %v235_v53 }
  0xa3   :  { %v240_v23 = vmul.f32 %v238_v10, %v225_v54  ;;  %v241_v24 = vmul.f32 %v239_v11, %v229_v55 }
  0xa5   :  { %v251_v60 = vpop.permute.xlu1 %250  ;;  %v249_v61 = vpop.permute.xlu0 %248 }
  0xa6   :  { %v253_v62 = vsel %vm252_vm9, %v249_v61, %v251_v60  ;;  %v254_v63 = vsel %vm252_vm9, %v251_v60, %v249_v61 }
  0xa7   :  { %v266_v6 = vmul.f32 %v259_v56, %v253_v62  ;;  %v267_v7 = vmul.f32 %v263_v57, %v254_v63  ;;  %v511_v63 = vld [vmem:[%s1552_s1] ss:$8 sm:$0x3] }
  0xa8   :  { %v526_v9 = vrot.slane %v511_v63, %v1218_v17 }
  0xa9   :  { %v271_v12 = vpop.permute.xlu1 %270  ;;  %v269_v13 = vpop.permute.xlu0 %268  ;;  %v1033_v14 = vpack.c.bf16 %v267_v7, %v233_v3  ;;  %v1035_v18 = vpack.c.bf16 %v266_v6, %v232_v2  ;;  %v1000_v2 = vld [vmem:[%s1552_s1 + $0x1] ss:$8 sm:$0x3]  ;;  %v522_v7 = vrot.slane %v511_v63, %v1216_v16 }
  0xaa   :  { %v272_v19 = vsel %vm252_vm9, %v269_v13, %v271_v12  ;;  %v273_v20 = vsel %vm252_vm9, %v271_v12, %v269_v13  ;;  %v554_v10 = vrot.slane %v1000_v2, %v1216_v16  ;;  %v558_v11 = vrot.slane %v1000_v2, %v1218_v17 }
  0xab   :  { %v274_v25 = vmul.f32 %v272_v19, %v259_v56  ;;  %v275_v26 = vmul.f32 %v273_v20, %v263_v57  ;;  %1034 = vmatprep.subr.bf16.mxu0 %v1033_v14 }
  0xac   :  { %1036 = vmatpush1.bf16.msra.mxu0 %v1035_v18 }
  0xad   :  { %v285_v27 = vpop.permute.xlu1 %284  ;;  %v283_v28 = vpop.permute.xlu0 %282  ;;  %v1051_v29 = vpack.c.bf16 %v275_v26, %v241_v24  ;;  %v1053_v30 = vpack.c.bf16 %v274_v25, %v240_v23 }
  0xae   :  { %v287_v31 = vsel %vm286_vm10, %v283_v28, %v285_v27  ;;  %v288_v32 = vsel %vm286_vm10, %v285_v27, %v283_v28 }
  0xaf   :  { %v300_v33 = vmul.f32 %v293_v21, %v287_v31  ;;  %v301_v34 = vmul.f32 %v297_v22, %v288_v32  ;;  %1052 = vmatprep.subr.bf16.mxu1 %v1051_v29 }
  0xb0   :  { %1054 = vmatpush1.bf16.msra.mxu1 %v1053_v30 }
  0xb1   :  { %v305_v36 = vpop.permute.xlu1 %304  ;;  %377 = vmatprep.subr.mxu0 %v301_v34  ;;  %v303_v38 = vpop.permute.xlu0 %302 }
  0xb2   :  { %v306_v39 = vsel %vm286_vm10, %v303_v38, %v305_v36  ;;  %v307_v40 = vsel %vm286_vm10, %v305_v36, %v303_v38  ;;  %378 = vmatpush1.msra.mxu0 %v300_v33 }
  0xb3   :  { %v308_v41 = vmul.f32 %v306_v39, %v293_v21  ;;  %v309_v42 = vmul.f32 %v307_v40, %v297_v22  ;;  %998 = vmatmul.mubr.msk.f32.vlgmr.msra.gmra.mrb[0].mxu0 %vm357_vm11, %v314_v35 }
  0xb4   :  { %881 = vmatprep.mubr.f32.mxu0 %v1111_v8 }
  0xb5   :  { %448 = vmatprep.subr.mxu1 %v309_v42  ;;  %v1001_v42 = vld [vmem:[%s1552_s1 + $0x2] ss:$8 sm:$0x3] }
  0xb6   :  { %449 = vmatpush1.msra.mxu1 %v308_v41 }
  0xb7   :  { %999 = vmatmul.mubr.msk.f32.vlgmr.msra.gmra.mrb[0].mxu1 %vm357_vm11, %v314_v35 }
  0xb8   :  { %952 = vmatprep.mubr.f32.mxu1 %v1111_v8 }
  0xc2   :  { %v355_v43 = vpop.permute.xlu0 %354 }
 0x186   :  { %v427_v44 = vpop.f32.mrb[0].mxu0 }
 0x187   :  { %v1356_v45 = vadd.f32 %v427_v44, %v355_v43  ;;  %v429_v46 = vpop.f32.mrb[1].mxu0 }
 0x188   :  { %v1358_v47 = vadd.f32 %v429_v46, %v355_v43 }
 0x189   :  { %v503_v48 = vmax.f32 %v1356_v45, 0.0 }
 0x18a   :  { %v498_v49 = vpop.f32.mrb[0].mxu1  ;;  %v504_v51 = vmax.f32 %v1358_v47, 0.0 }
 0x18b   :  { %v507_v50 = vsel %vm27_vm0, %v503_v48, 0.0  ;;  %v1365_v52 = vadd.f32 %v498_v49, %v355_v43  ;;  %v500_v53 = vpop.f32.mrb[1].mxu1  ;;  %v586_v49 = vrot.slane %v1001_v42, %v1216_v16 }
 0x18c   :  { %v1367_v8 = vadd.f32 %v500_v53, %v355_v43  ;;  %512 = vrot.lane.b32.xlu1 %v507_v50, %s1105_s25  ;;  %v508_v55 = vsel %vm27_vm0, %v504_v51, 0.0  ;;  %v1002_v43 = vld [vmem:[%s1552_s1 + $0x3] ss:$8 sm:$0x3] }
 0x18d   :  { %v505_v54 = vmax.f32 %v1365_v52, 0.0  ;;  %v618_v53 = vrot.slane %v1002_v43, %v1216_v16 }
 0x18e   :  { %v506_v57 = vmax.f32 %v1367_v8, 0.0  ;;  %v1005_v8 = vld [vmem:[%s1552_s1 + $0x7] ss:$8 sm:$0x3] }
 0x18f   :  { %v509_v56 = vsel %vm27_vm0, %v505_v54, 0.0 }
 0x190   :  { %531 = vrot.lane.b32.xlu0 %v509_v56, %s1105_s25  ;;  %514 = vrot.lane.b32.xlu1 %v508_v55, %s1105_s25  ;;  %v510_v58 = vsel %vm27_vm0, %v506_v57, 0.0 }
 0x194   :  { %544 = vrot.lane.b32.xlu0 %v507_v50, %s1106_s0  ;;  %533 = vrot.lane.b32.xlu1 %v510_v58, %s1105_s25 }
 0x198   :  { %563 = vrot.lane.b32.xlu0 %v509_v56, %s1106_s0  ;;  %546 = vrot.lane.b32.xlu1 %v508_v55, %s1106_s0 }
 0x19c   :  { %576 = vrot.lane.b32.xlu0 %v507_v50, %s1107_s26  ;;  %565 = vrot.lane.b32.xlu1 %v510_v58, %s1106_s0 }
 0x1a0   :  { %595 = vrot.lane.b32.xlu0 %v509_v56, %s1107_s26  ;;  %578 = vrot.lane.b32.xlu1 %v508_v55, %s1107_s26 }
 0x1a4   :  { %608 = vrot.lane.b32.xlu0 %v507_v50, %s1108_s27  ;;  %597 = vrot.lane.b32.xlu1 %v510_v58, %s1107_s26 }
 0x1a8   :  { %627 = vrot.lane.b32.xlu0 %v509_v56, %s1108_s27  ;;  %610 = vrot.lane.b32.xlu1 %v508_v55, %s1108_s27 }
 0x1ac   :  { %644 = vrot.lane.b32.xlu0 %v507_v50, %s1109_s28  ;;  %629 = vrot.lane.b32.xlu1 %v510_v58, %s1108_s27 }
 0x1b0   :  { %663 = vrot.lane.b32.xlu0 %v509_v56, %s1109_s28  ;;  %646 = vrot.lane.b32.xlu1 %v508_v55, %s1109_s28 }
 0x1b4   :  { %676 = vrot.lane.b32.xlu0 %v507_v50, %s1110_s29  ;;  %665 = vrot.lane.b32.xlu1 %v510_v58, %s1109_s28 }
 0x1b8   :  { %695 = vrot.lane.b32.xlu0 %v509_v56, %s1110_s29  ;;  %678 = vrot.lane.b32.xlu1 %v508_v55, %s1110_s29 }
 0x1bc   :  { %708 = vrot.lane.b32.xlu0 %v507_v50, %s1112_s30  ;;  %697 = vrot.lane.b32.xlu1 %v510_v58, %s1110_s29 }
 0x1c0   :  { %727 = vrot.lane.b32.xlu0 %v509_v56, %s1112_s30  ;;  %710 = vrot.lane.b32.xlu1 %v508_v55, %s1112_s30 }
 0x1c4   :  { %740 = vrot.lane.b32.xlu0 %v507_v50, %s1114_s7  ;;  %729 = vrot.lane.b32.xlu1 %v510_v58, %s1112_s30  ;;  %v590_v50 = vrot.slane %v1001_v42, %v1218_v17 }
 0x1c8   :  { %759 = vrot.lane.b32.xlu0 %v509_v56, %s1114_s7  ;;  %742 = vrot.lane.b32.xlu1 %v508_v55, %s1114_s7  ;;  %v622_v55 = vrot.slane %v1002_v43, %v1218_v17  ;;  %v1004_v43 = vld [vmem:[%s1552_s1 + $0x6] ss:$8 sm:$0x3] }
 0x1c9   :  { %v686_v52 = vrot.slane %v1004_v43, %v1216_v16 }
 0x1cc   :  { %811 = vperm.xlu0 %1102, %v808_v59   ;;  %761 = vrot.lane.b32.xlu1 %v510_v58, %s1114_s7 }
 0x1fe   :  { %v513_v60 = vpop.permute.xlu1 %512 }
 0x202   :  { %v532_v61 = vpop.permute.xlu0 %531  ;;  %v515_v62 = vpop.permute.xlu1 %514 }
 0x203   :  { %v516_v12 = vsel %vm44_vm1, %v513_v60, %v515_v62  ;;  %v517_v13 = vsel %vm44_vm1, %v515_v62, %v513_v60 }
 0x204   :  { %v529_v21 = vmul.f32 %v522_v7, %v517_v13  ;;  %v530_v22 = vmul.f32 %v526_v9, %v516_v12 }
 0x206   :  { %v545_v3 = vpop.permute.xlu0 %544  ;;  %v534_v6 = vpop.permute.xlu1 %533 }
 0x207   :  { %v535_v25 = vsel %vm44_vm1, %v532_v61, %v534_v6  ;;  %v536_v26 = vsel %vm44_vm1, %v534_v6, %v532_v61 }
 0x208   :  { %v537_v33 = vmul.f32 %v536_v26, %v522_v7  ;;  %v538_v34 = vmul.f32 %v535_v25, %v526_v9  ;;  %v1003_v7 = vld [vmem:[%s1552_s1 + $0x5] ss:$8 sm:$0x3] }
 0x20a   :  { %v564_v14 = vpop.permute.xlu0 %563  ;;  %v547_v18 = vpop.permute.xlu1 %546 }
 0x20b   :  { %v548_v19 = vsel %vm78_vm2, %v545_v3, %v547_v18  ;;  %v549_v20 = vsel %vm78_vm2, %v547_v18, %v545_v3 }
 0x20c   :  { %v561_v23 = vmul.f32 %v554_v10, %v549_v20  ;;  %v562_v24 = vmul.f32 %v558_v11, %v548_v19  ;;  %v654_v20 = vrot.slane %v1003_v7, %v1216_v16 }
 0x20e   :  { %v1057_v27 = vpack.c.bf16 %v561_v23, %v529_v21  ;;  %v577_v28 = vpop.permute.xlu0 %576  ;;  %v566_v29 = vpop.permute.xlu1 %565  ;;  %v1055_v30 = vpack.c.bf16 %v562_v24, %v530_v22  ;;  %v658_v21 = vrot.slane %v1003_v7, %v1218_v17 }
 0x20f   :  { %v567_v31 = vsel %vm78_vm2, %v564_v14, %v566_v29  ;;  %v568_v32 = vsel %vm78_vm2, %v566_v29, %v564_v14 }
 0x210   :  { %v569_v35 = vmul.f32 %v568_v32, %v554_v10  ;;  %v570_v36 = vmul.f32 %v567_v31, %v558_v11  ;;  %1056 = vmatprep.subr.bf16.mxu0 %v1055_v30 }
 0x211   :  { %1058 = vmatpush1.bf16.msra.mxu0 %v1057_v27 }
 0x212   :  { %v1075_v38 = vpack.c.bf16 %v569_v35, %v537_v33  ;;  %v596_v39 = vpop.permute.xlu0 %595  ;;  %v579_v40 = vpop.permute.xlu1 %578  ;;  %v1073_v41 = vpack.c.bf16 %v570_v36, %v538_v34 }
 0x213   :  { %v580_v56 = vsel %vm112_vm3, %v577_v28, %v579_v40  ;;  %v581_v58 = vsel %vm112_vm3, %v579_v40, %v577_v28 }
 0x214   :  { %1074 = vmatprep.subr.bf16.mxu1 %v1073_v41  ;;  %v593_v63 = vmul.f32 %v586_v49, %v581_v58  ;;  %v594_v2 = vmul.f32 %v590_v50, %v580_v56 }
 0x215   :  { %1076 = vmatpush1.bf16.msra.mxu1 %v1075_v38 }
 0x216   :  { %v609_v44 = vpop.permute.xlu0 %608  ;;  %v598_v46 = vpop.permute.xlu1 %597 }
 0x217   :  { %v599_v9 = vsel %vm112_vm3, %v596_v39, %v598_v46  ;;  %v600_v10 = vsel %vm112_vm3, %v598_v46, %v596_v39  ;;  %v718_v46 = vrot.slane %v1005_v8, %v1216_v16 }
 0x218   :  { %v601_v22 = vmul.f32 %v600_v10, %v586_v49  ;;  %v602_v23 = vmul.f32 %v599_v9, %v590_v50  ;;  %v722_v49 = vrot.slane %v1005_v8, %v1218_v17 }
 0x21a   :  { %v628_v59 = vpop.permute.xlu0 %627  ;;  %v611_v60 = vpop.permute.xlu1 %610 }
 0x21b   :  { %v612_v61 = vsel %vm146_vm4, %v609_v44, %v611_v60  ;;  %v613_v62 = vsel %vm146_vm4, %v611_v60, %v609_v44 }
 0x21c   :  { %v625_v3 = vmul.f32 %v618_v53, %v613_v62  ;;  %v626_v6 = vmul.f32 %v622_v55, %v612_v61 }
 0x21e   :  { %v1061_v11 = vpack.c.bf16 %v625_v3, %v593_v63  ;;  %v645_v12 = vpop.permute.xlu0 %644  ;;  %v630_v13 = vpop.permute.xlu1 %629  ;;  %v1059_v14 = vpack.c.bf16 %v626_v6, %v594_v2  ;;  %v1006_v63 = vld [vmem:[%s1552_s1 + $0x10] ss:$8 sm:$0x3] }
 0x21f   :  { %v631_v18 = vsel %vm146_vm4, %v628_v59, %v630_v13  ;;  %v632_v19 = vsel %vm146_vm4, %v630_v13, %v628_v59  ;;  %v754_v13 = vrot.slane %v1006_v63, %v1218_v17 }
 0x220   :  { %v633_v24 = vmul.f32 %v632_v19, %v618_v53  ;;  %v634_v25 = vmul.f32 %v631_v18, %v622_v55  ;;  %1060 = vmatprep.subr.bf16.mxu0 %v1059_v14 }
 0x221   :  { %1062 = vmatpush1.bf16.msra.mxu0 %v1061_v11 }
 0x222   :  { %v1079_v26 = vpack.c.bf16 %v633_v24, %v601_v22  ;;  %v664_v27 = vpop.permute.xlu0 %663  ;;  %v647_v28 = vpop.permute.xlu1 %646  ;;  %v1077_v29 = vpack.c.bf16 %v634_v25, %v602_v23 }
 0x223   :  { %v648_v30 = vsel %vm184_vm5, %v645_v12, %v647_v28  ;;  %v649_v31 = vsel %vm184_vm5, %v647_v28, %v645_v12  ;;  %v750_v12 = vrot.slane %v1006_v63, %v1216_v16 }
 0x224   :  { %v661_v32 = vmul.f32 %v654_v20, %v648_v30  ;;  %v662_v33 = vmul.f32 %v658_v21, %v649_v31  ;;  %1078 = vmatprep.subr.bf16.mxu1 %v1077_v29 }
 0x225   :  { %1080 = vmatpush1.bf16.msra.mxu1 %v1079_v26 }
 0x226   :  { %v1063_v34 = vpack.c.bf16 %v662_v33, %v504_v51  ;;  %v1066_v35 = vpack.c.bf16 %v661_v32, %v503_v48  ;;  %v677_v36 = vpop.permute.xlu0 %676  ;;  %v666_v38 = vpop.permute.xlu1 %665 }
 0x227   :  { %v667_v39 = vsel %vm184_vm5, %v664_v27, %v666_v38  ;;  %v668_v40 = vsel %vm184_vm5, %v666_v38, %v664_v27 }
 0x228   :  { %v669_v41 = vmul.f32 %v667_v39, %v654_v20  ;;  %v670_v42 = vmul.f32 %v668_v40, %v658_v21  ;;  %1065 = vmatprep.subr.msk.bf16.mxu0 %vm1287_vm7, %v1063_v34 }
 0x229   :  { %1068 = vmatpush1.bf16.msk.msra.mxu0 %vm1287_vm7, %v1066_v35 }
 0x22a   :  { %v1081_v45 = vpack.c.bf16 %v670_v42, %v506_v57  ;;  %v1084_v47 = vpack.c.bf16 %v669_v41, %v505_v54  ;;  %v696_v48 = vpop.permute.xlu0 %695  ;;  %v679_v51 = vpop.permute.xlu1 %678  ;;  %v690_v54 = vrot.slane %v1004_v43, %v1218_v17  ;;  %v771_v17 = vld [vmem:[%s1555_s4] sm:$0xf] }
 0x22b   :  { %v680_v50 = vsel %vm218_vm8, %v677_v36, %v679_v51  ;;  %v681_v37 = vsel %vm218_vm8, %v679_v51, %v677_v36 }
 0x22c   :  { %1083 = vmatprep.subr.msk.bf16.mxu1 %vm1287_vm7, %v1081_v45  ;;  %v693_v59 = vmul.f32 %v686_v52, %v680_v50  ;;  %v694_v60 = vmul.f32 %v690_v54, %v681_v37 }
 0x22d   :  { %1086 = vmatpush1.bf16.msk.msra.mxu1 %vm1287_vm7, %v1084_v47 }
 0x22e   :  { %v709_v57 = vpop.permute.xlu0 %708  ;;  %v698_v44 = vpop.permute.xlu1 %697 }
 0x22f   :  { %v699_v2 = vsel %vm218_vm8, %v696_v48, %v698_v44  ;;  %v700_v3 = vsel %vm218_vm8, %v698_v44, %v696_v48 }
 0x230   :  { %v701_v14 = vmul.f32 %v699_v2, %v686_v52  ;;  %v702_v18 = vmul.f32 %v700_v3, %v690_v54 }
 0x232   :  { %v728_v53 = vpop.permute.xlu0 %727  ;;  %v711_v55 = vpop.permute.xlu1 %710 }
 0x233   :  { %v712_v56 = vsel %vm252_vm9, %v709_v57, %v711_v55  ;;  %v713_v58 = vsel %vm252_vm9, %v711_v55, %v709_v57 }
 0x234   :  { %v725_v61 = vmul.f32 %v718_v46, %v712_v56  ;;  %v726_v62 = vmul.f32 %v722_v49, %v713_v58 }
 0x236   :  { %v1071_v6 = vpack.c.bf16 %v725_v61, %v693_v59  ;;  %v730_v7 = vpop.permute.xlu1 %729  ;;  %v1069_v9 = vpack.c.bf16 %v726_v62, %v694_v60  ;;  %v741_v19 = vpop.permute.xlu0 %740 }
 0x237   :  { %v731_v10 = vsel %vm252_vm9, %v728_v53, %v730_v7  ;;  %v732_v11 = vsel %vm252_vm9, %v730_v7, %v728_v53 }
 0x238   :  { %v733_v20 = vmul.f32 %v731_v10, %v718_v46  ;;  %v734_v21 = vmul.f32 %v732_v11, %v722_v49  ;;  %1070 = vmatprep.subr.bf16.mxu0 %v1069_v9 }
 0x239   :  { %1072 = vmatpush1.bf16.msra.mxu0 %v1071_v6 }
 0x23a   :  { %v1089_v22 = vpack.c.bf16 %v733_v20, %v701_v14  ;;  %v743_v23 = vpop.permute.xlu1 %742  ;;  %v1087_v24 = vpack.c.bf16 %v734_v21, %v702_v18  ;;  %v760_v28 = vpop.permute.xlu0 %759 }
 0x23b   :  { %v744_v25 = vsel %vm286_vm10, %v741_v19, %v743_v23  ;;  %v745_v26 = vsel %vm286_vm10, %v743_v23, %v741_v19 }
 0x23c   :  { %v757_v27 = vmul.f32 %v750_v12, %v744_v25  ;;  %v758_v16 = vmul.f32 %v754_v13, %v745_v26  ;;  %1088 = vmatprep.subr.bf16.mxu1 %v1087_v24 }
 0x23d   :  { %1090 = vmatpush1.bf16.msra.mxu1 %v1089_v22 }
 0x23e   :  { %833 = vmatprep.subr.mxu0 %v758_v16  ;;  %v762_v29 = vpop.permute.xlu1 %761 }
 0x23f   :  { %v763_v30 = vsel %vm286_vm10, %v760_v28, %v762_v29  ;;  %v764_v31 = vsel %vm286_vm10, %v762_v29, %v760_v28  ;;  %834 = vmatpush1.msra.mxu0 %v757_v27 }
 0x240   :  { %v765_v32 = vmul.f32 %v763_v30, %v750_v12  ;;  %v766_v33 = vmul.f32 %v764_v31, %v754_v13  ;;  %1007 = vmatmul.mubr.msk.f32.vlgmr.msra.gmra.mrb[2].mxu0 %vm357_vm11, %v771_v17 }
 0x242   :  { %904 = vmatprep.subr.mxu1 %v766_v33 }
 0x243   :  { %905 = vmatpush1.msra.mxu1 %v765_v32 }
 0x244   :  { %1008 = vmatmul.mubr.msk.f32.vlgmr.msra.gmra.mrb[2].mxu1 %vm357_vm11, %v771_v17 }
 0x24b   :  { %v812_v34 = vpop.permute.xlu0 %811 }
 0x313   :  { %v883_v35 = vpop.f32.mrb[2].mxu0 }
 0x314   :  { %v884_v36 = vadd.f32 %v883_v35, %v812_v34  ;;  %v885_v38 = vpop.f32.mrb[3].mxu0 }
 0x315   :  { %v886_v39 = vadd.f32 %v885_v38, %v812_v34 }
 0x316   :  { %v963_v40 = vadd.f32 %v884_v36, %v1159_v1 }
 0x317   :  { %v964_v41 = vadd.f32 %v886_v39, %v1171_v5  ;;  %v954_v15 = vpop.f32.mrb[2].mxu1 }
 0x318   :  { %v965_v42 = vmax.f32 %v963_v40, 0.0  ;;  %v955_v45 = vadd.f32 %v954_v15, %v812_v34  ;;  %v956_v47 = vpop.f32.mrb[3].mxu1 }
 0x319   :  { %v966_v48 = vmax.f32 %v964_v41, 0.0  ;;  %v957_v51 = vadd.f32 %v956_v47, %v812_v34 }
 0x31a   :  { %v976_v43 = vadd.f32 %v1154_v0, %v955_v45 }
 0x31b   :  { %v969_v8 = vcombine.low %v965_v42, %v966_v48  ;;  %v977_v57 = vadd.f32 %v957_v51, %v1167_v4 }
 0x31c   :  { %v978_v44 = vmax.f32 %v976_v43, 0.0 }
 0x31d   :  { %971 = vst [vmem:[%s1556_s6] sm:$0xff] %v969_v8  ;;  %v979_v52 = vmax.f32 %v977_v57, 0.0 }
 0x31f   :  { %v982_v1 = vcombine.low %v978_v44, %v979_v52 }
 0x321   :  { %1010 = vst [vmem:[%s1556_s6 + $0x8] sm:$0xff] %v982_v1 }

</bundles_post_ra>
